<compile_context>
chip_gen: v7x
topology: tpu7x:2x2x1
jax: 0.10.0
libtpu: 0.0.40
codegen_flags: <defaults>
</compile_context>

<pallas_src>
import functools

import jax
import jax.numpy as jnp
from jax.experimental import pallas as pl
from jax.experimental.pallas import tpu as pltpu


_LANES = 128
_ROW_ALIGN = 32          # int8 sublane tile; also covers bf16 (16) and f32 (8)
_PAD_LOGIT = -30.0       # exp(-30) ~ 9e-14: padded elements are numerically inert


def _ioubce_kernel(x_ref, t_ref, loss_ref, bce_acc, inter_acc, union_acc,
                   *, inv_n):
    """Processes one (BT, TR, 128) tile; reduces over the row grid axis."""
    r_idx = pl.program_id(1)

    @pl.when(r_idx == 0)
    def _init():
        bce_acc[...] = jnp.zeros_like(bce_acc)
        inter_acc[...] = jnp.zeros_like(inter_acc)
        union_acc[...] = jnp.zeros_like(union_acc)

    x = x_ref[...].astype(jnp.float32)      # (BT, TR, 128) logits
    t = t_ref[...].astype(jnp.float32)      # (BT, TR, 128) targets in {0, 1}

    # Shared transcendental (EUP op #1).
    e = jnp.exp(-jnp.abs(x))
    # Stable BCE-with-logits: max(x,0) - x*t + log(1+e)   (EUP op #2 = log).
    bce_elem = jnp.maximum(x, 0.0) - x * t + jnp.log(1.0 + e)
    # Stable sigmoid from the same e: EUP approx reciprocal (op #3) refined by
    # one Newton-Raphson step on the VPU (which has slack).
    d = 1.0 + e
    r = pl.reciprocal(d, approx=True)
    r = r * (2.0 - d * r)
    pred = jnp.where(x >= 0.0, r, e * r)

    # Per-sample partial sums for this row tile: sublane-only reduce into
    # lane-shaped accumulators; the cross-lane reduce happens once at the end.
    bce_acc[...] += jnp.sum(bce_elem, axis=1)
    inter_acc[...] += jnp.sum(pred * t, axis=1)
    union_acc[...] += jnp.sum(pred + t, axis=1)

    @pl.when(r_idx == pl.num_programs(1) - 1)
    def _finalize():
        bce = jnp.sum(bce_acc[...], axis=1, keepdims=True) * inv_n   # (BT, 1)
        inter = jnp.sum(inter_acc[...], axis=1, keepdims=True)
        union = jnp.sum(union_acc[...], axis=1, keepdims=True)
        iou = (inter + 1.0) / (union - inter + 1.0)
        loss_ref[...] = (1.0 - iou + bce)[:, :, None]                # (BT,1,1)


def _vmem_budget():
    """Generation-aware (per-input-block budget, vmem_limit_bytes)."""
    try:
        kind = jax.devices()[0].device_kind.lower()
    except Exception:  # pragma: no cover - defensive
        kind = ""
    if "v5 lite" in kind or "v5e" in kind or "v5lite" in kind:
        return 3 * 1024 * 1024, 32 * 1024 * 1024
    if "v6" in kind:
        return 6 * 1024 * 1024, 64 * 1024 * 1024
    if "v7" in kind or "7x" in kind:
        return 4 * 1024 * 1024, 40 * 1024 * 1024
    return 3 * 1024 * 1024, 32 * 1024 * 1024


def _choose_tiles(b, r, max_itemsize, budget_bytes, block_batch, block_rows):
    """Pick (BT, TR): BT caps grid[0]>=2 when b>=2 (megacore); TR % 32 == 0."""
    budget_elems = max(budget_bytes // max_itemsize, _ROW_ALIGN * _LANES)

    if block_batch is not None:
        bt = block_batch
    else:
        divs = [d for d in range(1, b + 1) if b % d == 0]
        # Keep >= 2 batch tiles whenever possible so both v7x TCs get work.
        pref = [d for d in divs if b // d >= 2] if b >= 2 else divs
        cands = pref or divs
        bt = 1
        for d in cands:
            if d * _ROW_ALIGN * _LANES <= budget_elems:
                bt = max(bt, d)

    if block_rows is not None:
        tr = block_rows
    else:
        cands = [d for d in range(_ROW_ALIGN, r + 1, _ROW_ALIGN) if r % d == 0]
        tr = _ROW_ALIGN
        for d in cands:
            if bt * d * _LANES <= budget_elems:
                tr = max(tr, d)

    assert b % bt == 0 and r % tr == 0, (b, r, bt, tr)
    return bt, tr


def ioubce_loss2(input_scale, target_scale, greater=False, *,
                 logits_dtype=jnp.bfloat16, targets_as_int8=True,
                 block_batch=None, block_rows=None, return_per_sample=False):
    """JAX/Pallas equivalent of IOUBCE_loss2.forward (NCHW inputs, C == 1)."""
    b, c, h, w = input_scale.shape
    # The PyTorch module's `filter(lambda x: x > thresh, loss)` only works
    # when each per-sample loss is a single element, i.e. single-channel maps.
    assert c == 1, "IOUBCE_loss2 per-sample scalar filter requires C == 1"
    n = h * w

    x = input_scale.reshape(b, n)
    t = target_scale.reshape(b, n)
    if logits_dtype is not None:
        x = x.astype(logits_dtype)            # bf16 default: halves HBM stream
    if targets_as_int8:
        t = t.astype(jnp.int8)                # {0,1} targets: 1 byte/elem

    # Lane-dense layout: pad flat length to a multiple of 128*32 so every
    # sample reshapes to (R, 128) with R % 32 == 0.  Padding uses a large
    # negative logit and target 0, which contributes ~0 to BCE/inter/union.
    pad = (-n) % (_LANES * _ROW_ALIGN)
    if pad:
        x = jnp.pad(x, ((0, 0), (0, pad)), constant_values=_PAD_LOGIT)
        t = jnp.pad(t, ((0, 0), (0, pad)), constant_values=0)
    cols = n + pad
    r = cols // _LANES
    x = x.reshape(b, r, _LANES)
    t = t.reshape(b, r, _LANES)

    budget_bytes, vmem_limit = _vmem_budget()
    max_itemsize = max(x.dtype.itemsize, t.dtype.itemsize)
    bt, tr = _choose_tiles(b, r, max_itemsize, budget_bytes,
                           block_batch, block_rows)
    grid = (b // bt, r // tr)

    kernel = functools.partial(_ioubce_kernel, inv_n=1.0 / float(n))

    in_bytes = (x.size * x.dtype.itemsize) + (t.size * t.dtype.itemsize)
    cost = pl.CostEstimate(flops=10 * b * cols,
                           transcendentals=3 * b * cols,
                           bytes_accessed=in_bytes + b * 4)

    per_sample = pl.pallas_call(
        kernel,
        out_shape=jax.ShapeDtypeStruct((b, 1, 1), jnp.float32),
        grid_spec=pltpu.PrefetchScalarGridSpec(
            num_scalar_prefetch=0,
            grid=grid,
            in_specs=[
                pl.BlockSpec((bt, tr, _LANES), lambda i, k: (i, k, 0)),
                pl.BlockSpec((bt, tr, _LANES), lambda i, k: (i, k, 0)),
            ],
            out_specs=pl.BlockSpec((bt, 1, 1), lambda i, k: (i, 0, 0)),
            scratch_shapes=[
                pltpu.VMEM((bt, _LANES), jnp.float32),   # bce partial sums
                pltpu.VMEM((bt, _LANES), jnp.float32),   # inter partial sums
                pltpu.VMEM((bt, _LANES), jnp.float32),   # union partial sums
            ],
        ),
        compiler_params=pltpu.CompilerParams(
            dimension_semantics=("parallel", "arbitrary"),
            vmem_limit_bytes=vmem_limit),
        cost_estimate=cost,
    )(x, t)

    loss = per_sample.reshape(b)                 # per-sample losses
    # Tiny epilogue over b scalars, kept in JAX.
    # TODO(synk): PyTorch filters a Python list with a strict inequality; this
    # is the data-parallel equivalent via masking (empty filtered list -> 0.0,
    # matching the module).
    thresh = jnp.sum(loss) / b
    mask = (loss > thresh) if greater else (loss < thresh)
    count = jnp.sum(mask.astype(jnp.float32))
    kept = jnp.sum(jnp.where(mask, loss, 0.0))
    total = jnp.where(count > 0.0, kept / jnp.maximum(count, 1.0),
                      jnp.float32(0.0))
    if return_per_sample:
        return total, loss
    return total


def _reference(input_scale, target_scale, greater=False,
               return_per_sample=False):
    """Pure-JAX reference matching the PyTorch semantics (for verification)."""
    b = input_scale.shape[0]
    x = input_scale.astype(jnp.float32).reshape(b, -1)
    t = target_scale.astype(jnp.float32).reshape(b, -1)
    bce_elem = jnp.maximum(x, 0.0) - x * t + jnp.log1p(jnp.exp(-jnp.abs(x)))
    bce = jnp.mean(bce_elem, axis=1)
    pred = jax.nn.sigmoid(x)
    inter = jnp.sum(pred * t, axis=1)
    union = jnp.sum(pred + t, axis=1)
    iou = (inter + 1.0) / (union - inter + 1.0)
    loss = 1.0 - iou + bce
    thresh = jnp.sum(loss) / b
    mask = (loss > thresh) if greater else (loss < thresh)
    cnt = jnp.sum(mask.astype(jnp.float32))
    total = jnp.where(cnt > 0.0,
                      jnp.sum(jnp.where(mask, loss, 0.0))
                      / jnp.maximum(cnt, 1.0),
                      jnp.float32(0.0))
    if return_per_sample:
        return total, loss
    return total


if __name__ == "__main__":
    root = jax.random.PRNGKey(0)

    cases = [
        # Exact-f32 path, tile-aligned geometry.
        dict(b=4, h=16, w=128, logits_dtype=jnp.float32, greater=False),
        dict(b=4, h=16, w=128, logits_dtype=jnp.float32, greater=True),
        # Default bf16 logits + int8 targets; forces a (2, 2) grid so both the
        # batch-parallel axis and the row-reduction axis are exercised.
        dict(b=16, h=64, w=128, logits_dtype=jnp.bfloat16, greater=False,
             block_batch=8, block_rows=32),
        # Non-aligned geometry (H%8 != 0, W%128 != 0): exercises the lane-dense
        # flatten + inert padding path.
        dict(b=3, h=15, w=20, logits_dtype=jnp.float32, greater=False),
        # Default bf16 path with automatic tiling.
        dict(b=4, h=32, w=256, logits_dtype=jnp.bfloat16, greater=False),
    ]

    for idx, case in enumerate(cases):
        b, h, w = case["b"], case["h"], case["w"]
        ldt = case["logits_dtype"]
        k1, k2 = jax.random.split(jax.random.fold_in(root, idx))
        logits = jax.random.normal(k1, (b, 1, h, w), dtype=jnp.float32)
        targets = jax.random.bernoulli(k2, 0.5, (b, 1, h, w)).astype(
            jnp.float32)

        tile_kw = {k: case[k] for k in ("block_batch", "block_rows")
                   if k in case}
        out, per = ioubce_loss2(logits, targets, greater=case["greater"],
                                logits_dtype=ldt, return_per_sample=True,
                                **tile_kw)
        out = jax.block_until_ready(out)

        # Reference sees the same (possibly bf16-rounded) logits the kernel
        # streams, so tolerances stay tight.
        ref, ref_per = _reference(logits.astype(ldt), targets,
                                  greater=case["greater"],
                                  return_per_sample=True)
        assert jnp.allclose(per, ref_per, atol=2e-4, rtol=2e-4), \
            (idx, per, ref_per)
        assert jnp.allclose(out, ref, atol=2e-4, rtol=2e-4), (idx, out, ref)

    print("KERNEL_OK")
</pallas_src>

<mosaic_0001>
module attributes {stable_mosaic.version = 11 : i64} {
  func.func @_ioubce_kernel(%arg0: i32, %arg1: i32, %arg2: memref<2x32x128xf32, #tpu.memory_space<vmem>>, %arg3: memref<2x32x128xi8, #tpu.memory_space<vmem>>, %arg4: memref<2x1x1xf32, #tpu.memory_space<vmem>>, %arg5: memref<2x128xf32, #tpu.memory_space<vmem>>, %arg6: memref<2x128xf32, #tpu.memory_space<vmem>>, %arg7: memref<2x128xf32, #tpu.memory_space<vmem>>) attributes {dimension_semantics = [#tpu.dimension_semantics<parallel>, #tpu.dimension_semantics<arbitrary>], iteration_bounds = array<i64: 2, 1>, scalar_prefetch = 0 : i64, scratch_operands = 3 : i64, tpu.core_type = #tpu.core_type<tc>, window_params = [{transform_indices = @transform_0, window_bounds = array<i64: 2, 32, 128>}, {transform_indices = @transform_1, window_bounds = array<i64: 2, 32, 128>}, {transform_indices = @transform_2, window_bounds = array<i64: 2, 1, 1>}]} {
    %c0_i32 = arith.constant 0 : i32
    %0 = arith.cmpi eq, %arg1, %c0_i32 : i32
    %1 = arith.extui %0 : i1 to i32
    %c0_i32_0 = arith.constant 0 : i32
    %2 = arith.cmpi ne, %1, %c0_i32_0 : i32
    scf.if %2 {
      %cst_28 = arith.constant 0.000000e+00 : f32
      %46 = vector.broadcast %cst_28 : f32 to vector<2x128xf32>
      %c0_29 = arith.constant 0 : index
      %c0_30 = arith.constant 0 : index
      %47 = vector.load %arg5[%c0_29, %c0_30] : memref<2x128xf32, #tpu.memory_space<vmem>>, vector<2x128xf32>
      tpu.vector_store %arg5[%c0_29, %c0_30], %46 {strides = array<i32>} : memref<2x128xf32, #tpu.memory_space<vmem>>, vector<2x128xf32>,
      %cst_31 = arith.constant 0.000000e+00 : f32
      %48 = vector.broadcast %cst_31 : f32 to vector<2x128xf32>
      %c0_32 = arith.constant 0 : index
      %c0_33 = arith.constant 0 : index
      %49 = vector.load %arg6[%c0_32, %c0_33] : memref<2x128xf32, #tpu.memory_space<vmem>>, vector<2x128xf32>
      tpu.vector_store %arg6[%c0_32, %c0_33], %48 {strides = array<i32>} : memref<2x128xf32, #tpu.memory_space<vmem>>, vector<2x128xf32>,
      %cst_34 = arith.constant 0.000000e+00 : f32
      %50 = vector.broadcast %cst_34 : f32 to vector<2x128xf32>
      %c0_35 = arith.constant 0 : index
      %c0_36 = arith.constant 0 : index
      %51 = vector.load %arg7[%c0_35, %c0_36] : memref<2x128xf32, #tpu.memory_space<vmem>>, vector<2x128xf32>
      tpu.vector_store %arg7[%c0_35, %c0_36], %50 {strides = array<i32>} : memref<2x128xf32, #tpu.memory_space<vmem>>, vector<2x128xf32>,
    } else {
    }
    %c0 = arith.constant 0 : index
    %c0_1 = arith.constant 0 : index
    %c0_2 = arith.constant 0 : index
    %3 = vector.load %arg2[%c0, %c0_1, %c0_2] : memref<2x32x128xf32, #tpu.memory_space<vmem>>, vector<2x32x128xf32>
    %c0_3 = arith.constant 0 : index
    %c0_4 = arith.constant 0 : index
    %c0_5 = arith.constant 0 : index
    %4 = vector.load %arg3[%c0_3, %c0_4, %c0_5] : memref<2x32x128xi8, #tpu.memory_space<vmem>>, vector<2x32x128xi8>
    %5 = arith.sitofp %4 : vector<2x32x128xi8> to vector<2x32x128xf32>
    %6 = math.absf %3 : vector<2x32x128xf32>
    %cst = arith.constant 0.000000e+00 : f32
    %7 = vector.broadcast %cst : f32 to vector<2x32x128xf32>
    %8 = arith.subf %7, %6 : vector<2x32x128xf32>
    %9 = math.exp %8 : vector<2x32x128xf32>
    %cst_6 = arith.constant 0.000000e+00 : f32
    %10 = vector.broadcast %cst_6 : f32 to vector<2x32x128xf32>
    %11 = arith.maximumf %3, %10 : vector<2x32x128xf32>
    %12 = arith.mulf %3, %5 : vector<2x32x128xf32>
    %13 = arith.subf %11, %12 : vector<2x32x128xf32>
    %cst_7 = arith.constant 1.000000e+00 : f32
    %14 = vector.broadcast %cst_7 : f32 to vector<2x32x128xf32>
    %15 = arith.addf %14, %9 : vector<2x32x128xf32>
    %16 = math.log %15 : vector<2x32x128xf32>
    %17 = arith.addf %13, %16 : vector<2x32x128xf32>
    %cst_8 = arith.constant 1.000000e+00 : f32
    %18 = vector.broadcast %cst_8 : f32 to vector<2x32x128xf32>
    %19 = arith.addf %18, %9 : vector<2x32x128xf32>
    %20 = tpu.reciprocal %19 {approx = true} : vector<2x32x128xf32> -> vector<2x32x128xf32>
    %21 = arith.mulf %19, %20 : vector<2x32x128xf32>
    %cst_9 = arith.constant 2.000000e+00 : f32
    %22 = vector.broadcast %cst_9 : f32 to vector<2x32x128xf32>
    %23 = arith.subf %22, %21 : vector<2x32x128xf32>
    %24 = arith.mulf %20, %23 : vector<2x32x128xf32>
    %cst_10 = arith.constant 0.000000e+00 : f32
    %25 = vector.broadcast %cst_10 : f32 to vector<2x32x128xf32>
    %26 = arith.cmpf oge, %3, %25 : vector<2x32x128xf32>
    %27 = arith.mulf %9, %24 : vector<2x32x128xf32>
    %28 = arith.select %26, %24, %27 : vector<2x32x128xi1>, vector<2x32x128xf32>
    %c0_11 = arith.constant 0 : index
    %c0_12 = arith.constant 0 : index
    %29 = vector.load %arg5[%c0_11, %c0_12] : memref<2x128xf32, #tpu.memory_space<vmem>>, vector<2x128xf32>
    %cst_13 = arith.constant dense<0.000000e+00> : vector<2x128xf32>
    %30 = vector.multi_reduction <add>, %17, %cst_13 [1] : vector<2x32x128xf32> to vector<2x128xf32>
    %31 = arith.addf %29, %30 : vector<2x128xf32>
    %c0_14 = arith.constant 0 : index
    %c0_15 = arith.constant 0 : index
    %32 = vector.load %arg5[%c0_14, %c0_15] : memref<2x128xf32, #tpu.memory_space<vmem>>, vector<2x128xf32>
    tpu.vector_store %arg5[%c0_14, %c0_15], %31 {strides = array<i32>} : memref<2x128xf32, #tpu.memory_space<vmem>>, vector<2x128xf32>,
    %c0_16 = arith.constant 0 : index
    %c0_17 = arith.constant 0 : index
    %33 = vector.load %arg6[%c0_16, %c0_17] : memref<2x128xf32, #tpu.memory_space<vmem>>, vector<2x128xf32>
    %34 = arith.mulf %28, %5 : vector<2x32x128xf32>
    %cst_18 = arith.constant dense<0.000000e+00> : vector<2x128xf32>
    %35 = vector.multi_reduction <add>, %34, %cst_18 [1] : vector<2x32x128xf32> to vector<2x128xf32>
    %36 = arith.addf %33, %35 : vector<2x128xf32>
    %c0_19 = arith.constant 0 : index
    %c0_20 = arith.constant 0 : index
    %37 = vector.load %arg6[%c0_19, %c0_20] : memref<2x128xf32, #tpu.memory_space<vmem>>, vector<2x128xf32>
    tpu.vector_store %arg6[%c0_19, %c0_20], %36 {strides = array<i32>} : memref<2x128xf32, #tpu.memory_space<vmem>>, vector<2x128xf32>,
    %c0_21 = arith.constant 0 : index
    %c0_22 = arith.constant 0 : index
    %38 = vector.load %arg7[%c0_21, %c0_22] : memref<2x128xf32, #tpu.memory_space<vmem>>, vector<2x128xf32>
    %39 = arith.addf %28, %5 : vector<2x32x128xf32>
    %cst_23 = arith.constant dense<0.000000e+00> : vector<2x128xf32>
    %40 = vector.multi_reduction <add>, %39, %cst_23 [1] : vector<2x32x128xf32> to vector<2x128xf32>
    %41 = arith.addf %38, %40 : vector<2x128xf32>
    %c0_24 = arith.constant 0 : index
    %c0_25 = arith.constant 0 : index
    %42 = vector.load %arg7[%c0_24, %c0_25] : memref<2x128xf32, #tpu.memory_space<vmem>>, vector<2x128xf32>
    tpu.vector_store %arg7[%c0_24, %c0_25], %41 {strides = array<i32>} : memref<2x128xf32, #tpu.memory_space<vmem>>, vector<2x128xf32>,
    %c0_i32_26 = arith.constant 0 : i32
    %43 = arith.cmpi eq, %arg1, %c0_i32_26 : i32
    %44 = arith.extui %43 : i1 to i32
    %c0_i32_27 = arith.constant 0 : i32
    %45 = arith.cmpi ne, %44, %c0_i32_27 : i32
    scf.if %45 {
      %c0_28 = arith.constant 0 : index
      %c0_29 = arith.constant 0 : index
      %46 = vector.load %arg5[%c0_28, %c0_29] : memref<2x128xf32, #tpu.memory_space<vmem>>, vector<2x128xf32>
      %cst_30 = arith.constant dense<0.000000e+00> : vector<2xf32>
      %47 = vector.multi_reduction <add>, %46, %cst_30 [1] : vector<2x128xf32> to vector<2xf32>
      %48 = vector.shape_cast %47 : vector<2xf32> to vector<2x1xf32>
      %cst_31 = arith.constant 4.8828125E-4 : f32
      %49 = vector.broadcast %cst_31 : f32 to vector<2x1xf32>
      %50 = arith.mulf %48, %49 : vector<2x1xf32>
      %c0_32 = arith.constant 0 : index
      %c0_33 = arith.constant 0 : index
      %51 = vector.load %arg6[%c0_32, %c0_33] : memref<2x128xf32, #tpu.memory_space<vmem>>, vector<2x128xf32>
      %cst_34 = arith.constant dense<0.000000e+00> : vector<2xf32>
      %52 = vector.multi_reduction <add>, %51, %cst_34 [1] : vector<2x128xf32> to vector<2xf32>
      %53 = vector.shape_cast %52 : vector<2xf32> to vector<2x1xf32>
      %c0_35 = arith.constant 0 : index
      %c0_36 = arith.constant 0 : index
      %54 = vector.load %arg7[%c0_35, %c0_36] : memref<2x128xf32, #tpu.memory_space<vmem>>, vector<2x128xf32>
      %cst_37 = arith.constant dense<0.000000e+00> : vector<2xf32>
      %55 = vector.multi_reduction <add>, %54, %cst_37 [1] : vector<2x128xf32> to vector<2xf32>
      %56 = vector.shape_cast %55 : vector<2xf32> to vector<2x1xf32>
      %cst_38 = arith.constant 1.000000e+00 : f32
      %57 = vector.broadcast %cst_38 : f32 to vector<2x1xf32>
      %58 = arith.addf %53, %57 : vector<2x1xf32>
      %59 = arith.subf %56, %53 : vector<2x1xf32>
      %cst_39 = arith.constant 1.000000e+00 : f32
      %60 = vector.broadcast %cst_39 : f32 to vector<2x1xf32>
      %61 = arith.addf %59, %60 : vector<2x1xf32>
      %62 = arith.divf %58, %61 : vector<2x1xf32>
      %cst_40 = arith.constant 1.000000e+00 : f32
      %63 = vector.broadcast %cst_40 : f32 to vector<2x1xf32>
      %64 = arith.subf %63, %62 : vector<2x1xf32>
      %65 = arith.addf %64, %50 : vector<2x1xf32>
      %66 = vector.shape_cast %65 : vector<2x1xf32> to vector<2x1x1xf32>
      %c0_41 = arith.constant 0 : index
      %c0_42 = arith.constant 0 : index
      %c0_43 = arith.constant 0 : index
      %67 = vector.load %arg4[%c0_41, %c0_42, %c0_43] : memref<2x1x1xf32, #tpu.memory_space<vmem>>, vector<2x1x1xf32>
      tpu.vector_store %arg4[%c0_41, %c0_42, %c0_43], %66 {strides = array<i32>} : memref<2x1x1xf32, #tpu.memory_space<vmem>>, vector<2x1x1xf32>,
    } else {
    }
    return
  }
  func.func @transform_0(%arg0: i32, %arg1: i32) -> (i32, i32, i32) {
    %c0_i32 = arith.constant 0 : i32
    %c0_i32_0 = arith.constant 0 : i32
    return %arg0, %arg1, %c0_i32 : i32, i32, i32
  }
  func.func @transform_1(%arg0: i32, %arg1: i32) -> (i32, i32, i32) {
    %c0_i32 = arith.constant 0 : i32
    %c0_i32_0 = arith.constant 0 : i32
    return %arg0, %arg1, %c0_i32 : i32, i32, i32
  }
  func.func @transform_2(%arg0: i32, %arg1: i32) -> (i32, i32, i32) {
    %c0_i32 = arith.constant 0 : i32
    %c0_i32_0 = arith.constant 0 : i32
    %c0_i32_1 = arith.constant 0 : i32
    return %arg0, %c0_i32, %c0_i32_0 : i32, i32, i32
  }
}

</mosaic_0001>

<bundles_post_ra>
// kernel: tpu_custom_call.1
= control target key start
LH: loop header
LB: loop body
LE: loop exit
PB: predicated region body
PF: predicated region fallthrough
CT: control target
= control target key end

     0   :  { %7 = vsyncpa [#allocation6], 0  ;;  %s1274_s0 = inlined_call_operand.hbm [shape: f32[4,32,128], index: 0, kind: input, shape index: {}]   ;;  %s1275_s1 = inlined_call_operand.hbm [shape: s8[4,32,128], index: 1, kind: input, shape index: {}]   ;;  %s1276_s2 = inlined_call_operand.vmem [shape: f32[4,1,1], index: 2, kind: output, shape index: {}]  }
   0x1   :  { %9 = vsyncpa [#allocation6 + $0x1], 0 }
   0x2   :  { %10 = vsyncpa [#allocation8], 0 }
   0x3   :  { %12 = vsyncpa [#allocation8 + $0x1], 0  ;;  %s900_s9 = smov 0   ;;  %s902_s10 = smov 0  }
   0x4   :  { %s904_s11 = smov 0   ;;  %s906_s12 = smov 0  }
   0x5   :  { %s908_s13 = smov 0   ;;  %s910_s14 = smov 0  }
   0x6 LB: > { %s631_s15 = sadd.s32 4294967295, %s878_s14   ;;  %s30_s16 = sadd.s32 1, %s874_s13  ;;  %s878_s14 = sphi %s910_s14, %s18_s14   ;;  %s874_s13 = sphi %s908_s13, %s1287_s13   ;;  %s870_s12 = sphi %s906_s12, %s1286_s12   ;;  %s866_s11 = sphi %s904_s11, %s1285_s11   ;;  %s862_s10 = sphi %s902_s10, %s1284_s10   ;;  %s858_s9 = sphi %s900_s9, %s1283_s9  }
   0x7   : > { %p32_p0 = scmp.ge.s32.totalorder %s30_s16, 2  ;;  %s39_s17 = sadd.s32 1, %s866_s11 }
   0x8   : > { %p46_p1 = scmp.ne.s32.totalorder %s866_s11, %s862_s10  ;;  %p47_p2 = scmp.eq.s32.totalorder %s878_s14, 0 }
   0x9   : > { %s1289_s16 = smov (%p32_p0, %s30_s16), 0  ;;  %p52_p4 = scmp.ne.s32.totalorder %s862_s10, %s858_s9 }
   0xa   : > { %p936_p3 = por %p47_p2, %p46_p1  ;;  %s34_s19 = ssub.s32 %s874_s13, %s1289_s16 }
   0xb   : > { %p53_p5 = scmp.eq.s32.totalorder %s631_s15, 0  ;;  %p37_p6 = scmp.eq.s32.totalorder %s34_s19, 0 }
   0xc   : > { %p662_p8 = scmp.lt.s32.totalorder %s878_s14, 2  ;;  %s952_s22 = sand.u32 1, %s866_s11  }
   0xd   : > { %p943_p7 = por %p53_p5, %p52_p4  ;;  %s649_s23 = sshll.u32 %s874_s13, 10 }
   0xe   : > { %s949_s21 = scalar_select %p37_p6, %s866_s11, %s39_s17  }
   0xf   : > { %s1279_s20 = scalar_select %p943_p7, 1, 0 }
  0x10   : > { %s635_s24 = sshll.u32 %s952_s22, 6  ;;  %s959_s27 = scalar_lea.hbm %s1274_s0, %s649_s23 }
  0x11   : > { %s134_s28 = scalar_lea.vmem [#allocation5], %s635_s24  ;;  %p963_p9 = pnand %p662_p8, %p936_p3 }
  0x12   : > { %s144_s29 = sshll.u32 %s134_s28, 4  ;;  %s131_s3 = scalar_lea.sflag [#allocation6], %s952_s22  ;;  %s967_s29 = int_to_ptr.vmem [resolvable:$true] %s144_s29 }
  0x13   : > { %s764_s4 = scalar_lea.hbm %s959_s27, 1024  ;;  %p766_p11 = pneg %p963_p9 }
  0x14   : > { %p765_p10 = scmp.ne.s32.totalorder %s959_s27, %s764_s4  ;;  %s769_s7 = scalar_lea.hbm %s1274_s0, 2048 }
  0x15   : > { %p770_p0 = scmp.lt.u32.totalorder %s959_s27, %s1274_s0  ;;  %p771_p1 = scmp.lt.u32.totalorder %s769_s7, %s764_s4 }
  0x16   : > { %p767_p12 = pnand %p766_p11, %p765_p10  ;;  %p773_p3 = scmp.lt.u32.totalorder %s764_s4, %s959_s27 }
  0x17   : > { %p772_p2 = por %p771_p1, %p770_p0 }
  0x18   : > { %p768_p13 = pneg %p767_p12 }
  0x19   : > { %p774_p4 = por %p773_p3, %p772_p2 }
  0x1b   : > { %p775_p5 = pnand %p774_p4, %p768_p13 }
  0x1d   : > { %778 = shalt.err (!%p775_p5)
}
  0x1e   : > { %s779_s15 = scalar_lea.vmem %s967_s29, 1024  ;;  %s880_s17 = smov [#allocation5]  }
  0x1f   : > { %p780_p6 = scmp.ne.s32.totalorder %s967_s29, %s779_s15  ;;  %s784_s18 = sshll.u32 %s880_s17, 4  ;;  %s785_s18 = int_to_ptr.vmem [resolvable:$false] %s784_s18 }
  0x20   : > { %s786_s19 = scalar_lea.vmem %s785_s18, 2048  ;;  %p787_p12 = scmp.lt.s32.totalorder %s967_s29, %s785_s18 }
  0x21   : > { %p782_p8 = pnand %p780_p6, %p766_p11  ;;  %p788_p0 = scmp.lt.s32.totalorder %s786_s19, %s779_s15 }
  0x23   : > { %p783_p10 = pneg %p782_p8  ;;  %p789_p1 = por %p788_p0, %p787_p12 }
  0x25   : > { %p790_p2 = pnand %p789_p1, %p783_p10 }
  0x27   : > { %793 = shalt.err (!%p790_p2)
}
  0x28   : > { %s881_s23 = smov 128   ;;  %s882_s24 = smov 8  }
  0x29   : > { %658 = dma.hbm_to_vmem [thread:$0]  (!%p963_p9), %s959_s27, 1024, %s967_s29, %s131_s3, %s881_s23, %s881_s23, %s882_s24  }
  0x2a   : > { %p642_p13 = scmp.ge.s32.totalorder %s878_s14, 1  ;;  %p174_p3 = scmp.lt.s32.totalorder %s878_s14, 3 }
  0x2b   : > { %s639_s25 = sshll.u32 %s952_s22, 4  ;;  %s650_s28 = sshll.u32 %s874_s13, 8 }
  0x2c   : > { %p1003_p4 = pnand %p642_p13, %p174_p3  ;;  %s158_s4 = scalar_lea.vmem [#allocation7], %s639_s25 }
  0x2d   : > { %s166_s5 = sshll.u32 %s158_s4, 4  ;;  %s1011_s8 = scalar_lea.hbm %s1275_s1, %s650_s28  ;;  %s1013_s5 = int_to_ptr.vmem [resolvable:$true] %s166_s5 }
  0x2e   : > { %s155_s27 = scalar_lea.sflag [#allocation8], %s952_s22  ;;  %s794_s29 = scalar_lea.hbm %s1011_s8, 256 }
  0x2f   : > { %p795_p5 = scmp.ne.s32.totalorder %s1011_s8, %s794_s29  ;;  %s799_s15 = scalar_lea.hbm %s1275_s1, 512 }
  0x30   : > { %p800_p10 = scmp.lt.u32.totalorder %s1011_s8, %s1275_s1  ;;  %p801_p12 = scmp.lt.u32.totalorder %s799_s15, %s794_s29 }
  0x31   : > { %p797_p6 = pnand %p795_p5, %p766_p11  ;;  %p803_p1 = scmp.lt.u32.totalorder %s794_s29, %s1011_s8 }
  0x32   : > { %p802_p0 = por %p801_p12, %p800_p10 }
  0x33   : > { %p798_p8 = pneg %p797_p6 }
  0x34   : > { %p804_p2 = por %p803_p1, %p802_p0 }
  0x36   : > { %p805_p13 = pnand %p804_p2, %p798_p8 }
  0x38   : > { %808 = shalt.err (!%p805_p13)
}
  0x39   : > { %s809_s19 = scalar_lea.vmem %s1013_s5, 256  ;;  %s883_s25 = smov [#allocation7]  }
  0x3a   : > { %p810_p3 = scmp.ne.s32.totalorder %s1013_s5, %s809_s19  ;;  %s814_s28 = sshll.u32 %s883_s25, 4  ;;  %s815_s28 = int_to_ptr.vmem [resolvable:$false] %s814_s28 }
  0x3b   : > { %s816_s4 = scalar_lea.vmem %s815_s28, 512  ;;  %p817_p7 = scmp.lt.s32.totalorder %s1013_s5, %s815_s28 }
  0x3c   : > { %p812_p5 = pnand %p810_p3, %p766_p11  ;;  %p818_p10 = scmp.lt.s32.totalorder %s816_s4, %s809_s19 }
  0x3e   : > { %p813_p6 = pneg %p812_p5  ;;  %p819_p12 = por %p818_p10, %p817_p7 }
  0x40   : > { %p820_p0 = pnand %p819_p12, %p813_p6 }
  0x42   : > { %823 = shalt.err (!%p820_p0)
}
  0x43   : > { %661 = dma.hbm_to_vmem [thread:$0]  (!%p963_p9), %s1011_s8, 256, %s1013_s5, %s155_s27, %s881_s23, %s881_s23, %s882_s24  }
  0x44   : > { %178 = sbr.rel (%p1003_p4) target bundleno = 329 (0x149), region = 28  ;;  %s180_s6 = sand.u32 (!%p1003_p4), 1, %s862_s10  }
  0x45   : > { %s643_s7 = sshll.u32 (!%p1003_p4), %s180_s6, 6  ;;  %s181_s29 = scalar_lea.sflag (!%p1003_p4), [#allocation6], %s180_s6 }
  0x46   : > { %s184_s3 = scalar_lea.vmem (!%p1003_p4), [#allocation5], %s643_s7  ;;  %p1282_p7 = scmp.ne.s32.totalorder (!%p1003_p4), %s1279_s20, 0 }
  0x4b   : > { %849 = dma.done.wait (%p1282_p7), %s181_s29, 1024  }
  0x4c   : > { %851 = vsyncadd (%p1282_p7), %s181_s29, 4294966272  ;;  %s644_s30 = sshll.u32 %s180_s6, 4  ;;  %s190_s22 = scalar_lea.sflag [#allocation8], %s180_s6 }
  0x4d   : > { %s1051_s9 = scalar_lea.vmem [#allocation7], %s644_s30 }
  0x4e   : > { %853 = dma.done.wait (%p1282_p7), %s190_s22, 256  }
  0x4f   : > { %855 = vsyncadd (%p1282_p7), %s190_s22, 4294967040  ;;  %v884_v0 = vmov 0.0   ;;  %v1057_v1 = vld [vmem:[%s184_s3] sm:$0xff]  ;;  %v1059_v2 = vld [vmem:[%s184_s3 + $0x8] sm:$0xff]  ;;  %vm424_vm8 = vcmask 1041409   ;;  %vm499_vm9 = vcmask 1041408  }
  0x50   : > { %231 = vst [vmem:[#allocation3] sm:$0x3] %v884_v0  ;;  %230 = vst [vmem:[#allocation2] sm:$0x3] %v884_v0  ;;  %v1061_v3 = vld [vmem:[%s184_s3 + $0x10] sm:$0xff]  ;;  %v1063_v4 = vld [vmem:[%s184_s3 + $0x18] sm:$0xff] }
  0x51   : > { %232 = vst [vmem:[#allocation4] sm:$0x3] %v884_v0  ;;  %v1065_v5 = vld [vmem:[%s184_s3 + $0x20] sm:$0xff]  ;;  %v1067_v6 = vld [vmem:[%s184_s3 + $0x28] sm:$0xff]  ;;  %v1069_v7 = vld [vmem:[%s184_s3 + $0x30] sm:$0xff]  ;;  %vm379_vm0 = vcmp.ge.f32.partialorder %v1057_v1, 0.0 }
  0x52   : > { %v1071_v8 = vld [vmem:[%s184_s3 + $0x38] sm:$0xff]  ;;  %v259_v9 = vand.u32 2147483647, %v1057_v1  ;;  %v260_v10 = vand.u32 2147483647, %v1059_v2  ;;  %v241_v33 = vld [vmem:[%s1051_s9] sm:$0xff] }
  0x53   : > { %v261_v11 = vand.u32 2147483647, %v1061_v3  ;;  %v262_v12 = vand.u32 2147483647, %v1063_v4  ;;  %v263_v13 = vand.u32 2147483647, %v1065_v5  ;;  %v243_v36 = vunpack.c.0.s8 %v241_v33 }
  0x54   : > { %v264_v14 = vand.u32 2147483647, %v1067_v6  ;;  %v265_v15 = vand.u32 2147483647, %v1069_v7  ;;  %v266_v16 = vand.u32 2147483647, %v1071_v8  ;;  %v244_v37 = vunpack.c.1.s8 %v241_v33 }
  0x55   : > { %v267_v17 = vsub.f32 0.0, %v259_v9  ;;  %v268_v18 = vsub.f32 0.0, %v260_v10  ;;  %v269_v19 = vsub.f32 0.0, %v261_v11  ;;  %v270_v20 = vsub.f32 0.0, %v262_v12  ;;  %v242_v34 = vld [vmem:[%s1051_s9 + $0x8] sm:$0xff]  ;;  %s645_s20 = sshll.u32 %s870_s12, 1 }
  0x56   : > { %v271_v21 = vsub.f32 0.0, %v263_v13  ;;  %v272_v22 = vsub.f32 0.0, %v264_v14  ;;  %v273_v23 = vsub.f32 0.0, %v265_v15  ;;  %v274_v27 = vsub.f32 0.0, %v266_v16  ;;  %p222_p9 = scmp.lt.s32.totalorder %s645_s20, 3 }
  0x57   : > { %v275_v24 = vmul.f32 1.442695, %v267_v17  ;;  %v277_v25 = vmul.f32 1.442695, %v268_v18  ;;  %v279_v26 = vmul.f32 1.442695, %v269_v19  ;;  %v245_v39 = vunpack.c.2.s8 %v241_v33 }
  0x58   : > { %v281_v28 = vmul.f32 1.442695, %v270_v20  ;;  %v283_v29 = vmul.f32 1.442695, %v271_v21  ;;  %v285_v30 = vmul.f32 1.442695, %v272_v22  ;;  %v246_v40 = vunpack.c.3.s8 %v241_v33 }
  0x59   : > { %714 = vpow2.f32 %v275_v24  ;;  %v287_v31 = vmul.f32 1.442695, %v273_v23  ;;  %v289_v32 = vmul.f32 1.442695, %v274_v27  ;;  %v247_v43 = vunpack.c.0.s8 %v242_v34  ;;  %s1291_s20 = smov (!%p222_p9, %s645_s20), 3 }
  0x5a   : > { %716 = vpow2.f32 %v277_v25  ;;  %v248_v44 = vunpack.c.1.s8 %v242_v34  ;;  %v249_v47 = vunpack.c.2.s8 %v242_v34  ;;  %v250_v48 = vunpack.c.3.s8 %v242_v34  ;;  %s224_s26 = scalar_lea.vmem %s1276_s2, %s1291_s20 }
  0x5b   : > { %718 = vpow2.f32 %v279_v26  ;;  %v1098_v51 = vcvt.s32.f32 %v243_v36  ;;  %v1100_v52 = vcvt.s32.f32 %v244_v37  ;;  %v1107_v55 = vcvt.s32.f32 %v245_v39 }
  0x5c   : > { %720 = vpow2.f32 %v281_v28  ;;  %v1109_v56 = vcvt.s32.f32 %v246_v40  ;;  %v1117_v59 = vcvt.s32.f32 %v247_v43  ;;  %v1119_v60 = vcvt.s32.f32 %v248_v44 }
  0x5d   : > { %722 = vpow2.f32 %v283_v29  ;;  %v1127_v63 = vcvt.s32.f32 %v249_v47  ;;  %v1129_v0 = vcvt.s32.f32 %v250_v48  ;;  %v299_v11 = vmul.f32 %v1098_v51, %v1057_v1 }
  0x5e   : > { %724 = vpow2.f32 %v285_v30  ;;  %v300_v12 = vmul.f32 %v1100_v52, %v1059_v2  ;;  %v291_v13 = vmax.f32 %v1057_v1, 0.0  ;;  %v292_v14 = vmax.f32 %v1059_v2, 0.0 }
  0x5f   : > { %726 = vpow2.f32 %v287_v31  ;;  %v301_v15 = vmul.f32 %v1107_v55, %v1061_v3  ;;  %v293_v16 = vmax.f32 %v1061_v3, 0.0  ;;  %v294_v17 = vmax.f32 %v1063_v4, 0.0 }
  0x60   : > { %728 = vpow2.f32 %v289_v32  ;;  %v302_v18 = vmul.f32 %v1109_v56, %v1063_v4  ;;  %v295_v19 = vmax.f32 %v1065_v5, 0.0  ;;  %v296_v20 = vmax.f32 %v1067_v6, 0.0 }
  0x61   : > { %v303_v21 = vmul.f32 %v1117_v59, %v1065_v5  ;;  %v304_v22 = vmul.f32 %v1119_v60, %v1067_v6  ;;  %vm380_vm1 = vcmp.ge.f32.partialorder %v1059_v2, 0.0  ;;  %v297_v23 = vmax.f32 %v1069_v7, 0.0 }
  0x62   : > { %v298_v24 = vmax.f32 %v1071_v8, 0.0  ;;  %v305_v25 = vmul.f32 %v1127_v63, %v1069_v7  ;;  %vm381_vm2 = vcmp.ge.f32.partialorder %v1061_v3, 0.0  ;;  %v306_v27 = vmul.f32 %v1129_v0, %v1071_v8 }
  0x63   : > { %v1083_v35 = vpop.eup %714  ;;  %v1168_v28 = vsub.f32 %v291_v13, %v299_v11  ;;  %v1170_v29 = vsub.f32 %v292_v14, %v300_v12  ;;  %vm382_vm3 = vcmp.ge.f32.partialorder %v1063_v4, 0.0  ;;  %v1173_v32 = vsub.f32 %v293_v16, %v301_v15 }
  0x64   : > { %v1085_v38 = vpop.eup %716  ;;  %v315_v41 = vadd.f32 1.0, %v1083_v35  ;;  %v1175_v33 = vsub.f32 %v294_v17, %v302_v18  ;;  %vm383_vm4 = vcmp.ge.f32.partialorder %v1065_v5, 0.0  ;;  %v1179_v37 = vsub.f32 %v295_v19, %v303_v21 }
  0x65   : > { %v1088_v42 = vpop.eup %718  ;;  %v316_v45 = vadd.f32 1.0, %v1085_v38  ;;  %v1181_v39 = vsub.f32 %v296_v20, %v304_v22  ;;  %vm384_vm5 = vcmp.ge.f32.partialorder %v1067_v6, 0.0  ;;  %v1186_v44 = vsub.f32 %v297_v23, %v305_v25 }
  0x66   : > { %v1091_v46 = vpop.eup %720  ;;  %v1094_v49 = vadd.f32 1.0, %v1088_v42  ;;  %730 = vrcp.f32 %v315_v41  ;;  %vm385_vm6 = vcmp.ge.f32.partialorder %v1069_v7, 0.0  ;;  %v1191_v11 = vsub.f32 %v298_v24, %v306_v27 }
  0x67   : > { %v1096_v50 = vpop.eup %722  ;;  %v1103_v53 = vadd.f32 1.0, %v1091_v46  ;;  %732 = vrcp.f32 %v316_v45  ;;  %vm386_vm7 = vcmp.ge.f32.partialorder %v1071_v8, 0.0  ;;  %vm530_vm10 = vcmask 0  }
  0x68   : > { %v1105_v54 = vpop.eup %724  ;;  %v1112_v57 = vadd.f32 1.0, %v1096_v50  ;;  %734 = vrcp.f32 %v1094_v49 }
  0x69   : > { %v1115_v58 = vpop.eup %726  ;;  %v1122_v61 = vadd.f32 1.0, %v1105_v54  ;;  %736 = vrcp.f32 %v1103_v53 }
  0x6a   : > { %v1125_v62 = vpop.eup %728  ;;  %v1132_v9 = vadd.f32 1.0, %v1115_v58  ;;  %738 = vrcp.f32 %v1112_v57 }
  0x6b   : > { %v1136_v10 = vadd.f32 1.0, %v1125_v62  ;;  %740 = vrcp.f32 %v1122_v61 }
  0x6c   : > { %742 = vrcp.f32 %v1132_v9 }
  0x6d   : > { %744 = vrcp.f32 %v1136_v10 }
  0x6e   : > { %746 = vlog2.f32 %v315_v41 }
  0x6f   : > { %748 = vlog2.f32 %v316_v45 }
  0x70   : > { %v731_v26 = vpop.eup %730  ;;  %750 = vlog2.f32 %v1094_v49 }
  0x71   : > { %v733_v30 = vpop.eup %732  ;;  %v355_v31 = vmul.f32 %v731_v26, %v315_v41  ;;  %752 = vlog2.f32 %v1103_v53 }
  0x72   : > { %v735_v34 = vpop.eup %734  ;;  %v356_v36 = vmul.f32 %v733_v30, %v316_v45  ;;  %754 = vlog2.f32 %v1112_v57 }
  0x73   : > { %v737_v40 = vpop.eup %736  ;;  %v357_v41 = vmul.f32 %v735_v34, %v1094_v49  ;;  %v363_v43 = vsub.f32 2.0, %v355_v31  ;;  %756 = vlog2.f32 %v1122_v61 }
  0x74   : > { %v739_v47 = vpop.eup %738  ;;  %v358_v45 = vmul.f32 %v737_v40, %v1103_v53  ;;  %v364_v48 = vsub.f32 2.0, %v356_v36  ;;  %758 = vlog2.f32 %v1132_v9 }
  0x75   : > { %v741_v12 = vpop.eup %740  ;;  %v359_v49 = vmul.f32 %v739_v47, %v1112_v57  ;;  %v365_v13 = vsub.f32 2.0, %v357_v41  ;;  %v371_v14 = vmul.f32 %v731_v26, %v363_v43  ;;  %760 = vlog2.f32 %v1136_v10 }
  0x76   : > { %v743_v15 = vpop.eup %742  ;;  %v360_v16 = vmul.f32 %v741_v12, %v1122_v61  ;;  %v366_v53 = vsub.f32 2.0, %v358_v45  ;;  %v372_v17 = vmul.f32 %v733_v30, %v364_v48 }
  0x77   : > { %v745_v18 = vpop.eup %744  ;;  %v361_v19 = vmul.f32 %v743_v15, %v1132_v9  ;;  %v367_v20 = vsub.f32 2.0, %v359_v49  ;;  %v373_v21 = vmul.f32 %v735_v34, %v365_v13  ;;  %v387_v57 = vmul.f32 %v1083_v35, %v371_v14 }
  0x78   : > { %v362_v22 = vmul.f32 %v745_v18, %v1136_v10  ;;  %v368_v23 = vsub.f32 2.0, %v360_v16  ;;  %v374_v24 = vmul.f32 %v737_v40, %v366_v53  ;;  %v388_v25 = vmul.f32 %v1085_v38, %v372_v17  ;;  %v747_v26 = vpop.eup %746 }
  0x79   : > { %v369_v27 = vsub.f32 2.0, %v361_v19  ;;  %v375_v61 = vmul.f32 %v739_v47, %v367_v20  ;;  %v389_v30 = vmul.f32 %v1088_v42, %v373_v21  ;;  %v395_v31 = vsel %vm379_vm0, %v371_v14, %v387_v57  ;;  %v749_v36 = vpop.eup %748 }
  0x7a   : > { %v370_v9 = vsub.f32 2.0, %v362_v22  ;;  %v376_v41 = vmul.f32 %v741_v12, %v368_v23  ;;  %v390_v34 = vmul.f32 %v1091_v46, %v374_v24  ;;  %v396_v35 = vsel %vm380_vm1, %v372_v17, %v388_v25  ;;  %v751_v10 = vpop.eup %750 }
  0x7b   : > { %v377_v40 = vmul.f32 %v743_v15, %v369_v27  ;;  %v391_v38 = vmul.f32 %v1096_v50, %v375_v61  ;;  %v397_v43 = vsel %vm381_vm2, %v373_v21, %v389_v30  ;;  %v430_v42 = vmul.f32 %v395_v31, %v1098_v51  ;;  %v753_v47 = vpop.eup %752 }
  0x7c   : > { %v378_v1 = vmul.f32 %v745_v18, %v370_v9  ;;  %v392_v45 = vmul.f32 %v1105_v54, %v376_v41  ;;  %v398_v48 = vsel %vm382_vm3, %v374_v24, %v390_v34  ;;  %v431_v46 = vmul.f32 %v396_v35, %v1100_v52  ;;  %v755_v2 = vpop.eup %754 }
  0x7d   : > { %v393_v12 = vmul.f32 %v1115_v58, %v377_v40  ;;  %v399_v50 = vsel %vm383_vm4, %v375_v61, %v391_v38  ;;  %v432_v3 = vmul.f32 %v397_v43, %v1107_v55  ;;  %v433_v49 = vmul.f32 %v398_v48, %v1109_v56  ;;  %v757_v13 = vpop.eup %756 }
  0x7e   : > { %v394_v14 = vmul.f32 %v1125_v62, %v378_v1  ;;  %v400_v54 = vsel %vm384_vm5, %v376_v41, %v392_v45  ;;  %v434_v4 = vmul.f32 %v399_v50, %v1117_v59  ;;  %v438_v15 = vadd.f32 %v431_v46, %v430_v42  ;;  %v759_v16 = vpop.eup %758 }
  0x7f   : > { %v401_v58 = vsel %vm385_vm6, %v377_v40, %v393_v12  ;;  %v435_v5 = vmul.f32 %v400_v54, %v1119_v60  ;;  %v463_v53 = vadd.f32 %v395_v31, %v1098_v51  ;;  %v464_v17 = vadd.f32 %v396_v35, %v1100_v52  ;;  %v761_v18 = vpop.eup %760 }
  0x80   : > { %v402_v62 = vsel %vm386_vm7, %v378_v1, %v394_v14  ;;  %v436_v6 = vmul.f32 %v401_v58, %v1127_v63  ;;  %v439_v19 = vadd.f32 %v438_v15, %v432_v3  ;;  %v465_v20 = vadd.f32 %v397_v43, %v1107_v55 }
  0x81   : > { %v437_v21 = vmul.f32 %v402_v62, %v1129_v0  ;;  %v447_v57 = vadd.f32 %v435_v5, %v434_v4  ;;  %v466_v7 = vadd.f32 %v398_v48, %v1109_v56  ;;  %v467_v22 = vadd.f32 %v399_v50, %v1117_v59 }
  0x82   : > { %v440_v23 = vadd.f32 %v439_v19, %v433_v49  ;;  %v468_v51 = vadd.f32 %v400_v54, %v1119_v60  ;;  %v469_v52 = vadd.f32 %v401_v58, %v1127_v63  ;;  %v470_v8 = vadd.f32 %v402_v62, %v1129_v0 }
  0x83   : > { %v448_v24 = vadd.f32 %v447_v57, %v436_v6  ;;  %v471_v25 = vadd.f32 %v464_v17, %v463_v53  ;;  %v324_v27 = vmul.f32 0.6931472, %v747_v26  ;;  %v326_v61 = vmul.f32 0.6931472, %v749_v36  ;;  %v429_v17 = vld [vmem:[#allocation3] sm:$0x3] }
  0x84   : > { %v441_v30 = vrot.slane %v440_v23, 4  ;;  %v480_v55 = vadd.f32 %v468_v51, %v467_v22  ;;  %v328_v31 = vmul.f32 0.6931472, %v751_v10  ;;  %v330_v9 = vmul.f32 0.6931472, %v753_v47 }
  0x85   : > { %v449_v41 = vadd.f32 %v448_v24, %v437_v21  ;;  %v472_v34 = vadd.f32 %v471_v25, %v465_v20  ;;  %v332_v56 = vmul.f32 0.6931472, %v755_v2  ;;  %v334_v35 = vmul.f32 0.6931472, %v757_v13 }
  0x86   : > { %v442_v59 = vadd.f32 %v441_v30, %v440_v23  ;;  %v481_v40 = vadd.f32 %v480_v55, %v469_v52  ;;  %v336_v38 = vmul.f32 0.6931472, %v759_v16  ;;  %v338_v60 = vmul.f32 0.6931472, %v761_v18  ;;  %v462_v23 = vld [vmem:[#allocation4] sm:$0x3] }
  0x87   : > { %v450_v43 = vrot.slane %v449_v41, 4  ;;  %v473_v63 = vadd.f32 %v472_v34, %v466_v7  ;;  %v339_v0 = vadd.f32 %v324_v27, %v1168_v28  ;;  %v340_v42 = vadd.f32 %v326_v61, %v1170_v29 }
  0x88   : > { %v443_v26 = vrot.slane %v442_v59, 2  ;;  %v482_v36 = vadd.f32 %v481_v40, %v470_v8  ;;  %v341_v1 = vadd.f32 %v328_v31, %v1173_v32  ;;  %v342_v10 = vadd.f32 %v330_v9, %v1175_v33  ;;  %v403_v31 = vld [vmem:[#allocation2] sm:$0x3] }
  0x89   : > { %v451_v47 = vadd.f32 %v450_v43, %v449_v41  ;;  %v474_v45 = vrot.slane %v473_v63, 4  ;;  %v343_v48 = vadd.f32 %v332_v56, %v1179_v37  ;;  %v344_v46 = vadd.f32 %v334_v35, %v1181_v39 }
  0x8a   : > { %v444_v2 = vadd.f32 %v443_v26, %v442_v59  ;;  %v483_v12 = vrot.slane %v482_v36, 4  ;;  %v345_v50 = vadd.f32 %v336_v38, %v1186_v44  ;;  %v346_v28 = vadd.f32 %v338_v60, %v1191_v11 }
  0x8b   : > { %v452_v3 = vrot.slane %v451_v47, 2  ;;  %v475_v29 = vadd.f32 %v474_v45, %v473_v63  ;;  %v404_v49 = vadd.f32 %v340_v42, %v339_v0  ;;  %v413_v13 = vadd.f32 %v344_v46, %v343_v48 }
  0x8c   : > { %v445_v14 = vrot.slane %v444_v2, 1  ;;  %v484_v32 = vadd.f32 %v483_v12, %v482_v36  ;;  %v520_v36 = vlaneseq }
  0x8d   : > { %v453_v54 = vadd.f32 %v452_v3, %v451_v47  ;;  %v476_v33 = vrot.slane %v475_v29, 2  ;;  %v405_v4 = vadd.f32 %v404_v49, %v341_v1  ;;  %v414_v15 = vadd.f32 %v413_v13, %v345_v50 }
  0x8e   : > { %v446_v16 = vadd.f32 %v445_v14, %v444_v2  ;;  %v485_v37 = vrot.slane %v484_v32, 2  ;;  %v521_v47 = vshrl.u32 %v520_v36, 7 }
  0x8f   : > { %v454_v58 = vrot.slane %v453_v54, 1  ;;  %v477_v39 = vadd.f32 %v476_v33, %v475_v29  ;;  %v406_v5 = vadd.f32 %v405_v4, %v342_v10  ;;  %v415_v53 = vadd.f32 %v414_v15, %v346_v28 }
  0x90   : > { %v486_v44 = vadd.f32 %v485_v37, %v484_v32  ;;  %v522_v12 = vsub.s32 0, %v521_v47  ;;  %v526_v50 = vsub.s32 1, %v521_v47 }
  0x91   : > { %v455_v11 = vadd.f32 %v454_v58, %v453_v54  ;;  %v478_v18 = vrot.slane %v477_v39, 1  ;;  %v407_v62 = vrot.slane %v406_v5, 4  ;;  %v416_v6 = vrot.slane %v415_v53, 4 }
  0x92   : > { %v487_v19 = vrot.slane %v486_v44, 1 }
  0x93   : > { %v458_v20 = vsel %vm424_vm8, %v455_v11, %v446_v16  ;;  %v479_v21 = vadd.f32 %v478_v18, %v477_v39  ;;  %v408_v57 = vadd.f32 %v407_v62, %v406_v5  ;;  %v417_v7 = vadd.f32 %v416_v6, %v415_v53 }
  0x94   : > { %v460_v22 = vadd.f32 %v458_v20, %v429_v17  ;;  %v488_v51 = vadd.f32 %v487_v19, %v486_v44 }
  0x95   : > { %v409_v52 = vrot.slane %v408_v57, 2  ;;  %v418_v8 = vrot.slane %v417_v7, 2 }
  0x96   : > { %461 = vst [vmem:[#allocation3] sm:$0x3] %v460_v22  ;;  %v491_v24 = vsel %vm424_vm8, %v488_v51, %v479_v21 }
  0x97   : > { %v493_v25 = vadd.f32 %v491_v24, %v462_v23  ;;  %v410_v27 = vadd.f32 %v409_v52, %v408_v57  ;;  %v419_v61 = vadd.f32 %v418_v8, %v417_v7 }
  0x99   : > { %494 = vst [vmem:[#allocation4] sm:$0x3] %v493_v25  ;;  %v411_v30 = vrot.slane %v410_v27, 1  ;;  %v420_v55 = vrot.slane %v419_v61, 1 }
  0x9b   : > { %v412_v9 = vadd.f32 %v411_v30, %v410_v27  ;;  %v421_v41 = vadd.f32 %v420_v55, %v419_v61 }
  0x9d   : > { %v504_v34 = vld [vmem:[#allocation3] sm:$0x3]  ;;  %v425_v56 = vsel %vm424_vm8, %v421_v41, %v412_v9 }
  0x9e   : > { %v505_v35 = vsel %vm499_vm9, %v504_v34, 0.0  ;;  %v427_v59 = vadd.f32 %v425_v56, %v403_v31 }
  0x9f   : > { %506 = vadd.xlane.f32.xlu0 %v505_v35 }
  0xa0   : > { %v508_v40 = vld [vmem:[#allocation4] sm:$0x3]  ;;  %428 = vst [vmem:[#allocation2] sm:$0x3] %v427_v59 }
  0xa1   : > { %v509_v38 = vsel %vm499_vm9, %v508_v40, 0.0 }
  0xa3   : > { %510 = vadd.xlane.f32.xlu0 %v509_v38 }
  0xa7   : > { %v498_v60 = vld [vmem:[#allocation2] sm:$0x3] }
  0xa8   : > { %v500_v43 = vsel %vm499_vm9, %v498_v60, 0.0 }
  0xa9   : > { %501 = vadd.xlane.f32.xlu1 %v500_v43 }
 0x12c   : > { %v507_v63 = vpop.xlane.xlu0 %506 }
 0x12d   : > { %v512_v10 = vadd.f32 1.0, %v507_v63 }
 0x130   : > { %v511_v0 = vpop.xlane.xlu0 %510 }
 0x131   : > { %v513_v42 = vsub.f32 %v511_v0, %v507_v63 }
 0x133   : > { %v514_v26 = vadd.f32 1.0, %v513_v42 }
 0x135   : > { %762 = vrcp.f32 %v514_v26 }
 0x136   : > { %v502_v1 = vpop.xlane.xlu1 %501 }
 0x137   : > { %v503_v46 = vmul.f32 0.00048828125, %v502_v1 }
 0x13f   : > { %v763_v45 = vpop.eup %762 }
 0x140   : > { %v516_v48 = vmul.f32 %v763_v45, %v512_v10 }
 0x142   : > { %v517_v2 = vsub.f32 1.0, %v516_v48 }
 0x144   : > { %v518_v28 = vadd.f32 %v517_v2, %v503_v46 }
 0x146   : > { %v523_v3 = vrot.slane %v518_v28, %v522_v12  ;;  %v527_v29 = vrot.slane %v518_v28, %v526_v50 }
 0x148   : > { %531 = vst.msk [vmem:[%s224_s26] sm:$0x1] %vm530_vm10, %v523_v3  ;;  %532 = vst.msk [vmem:[%s224_s26 + $0x1] sm:$0x1] %vm530_vm10, %v527_v29 }
 0x149 PF: > { %s18_s14 = sadd.s32 1, %s878_s14   ;;  %s1283_s9 = smov %s862_s10 }
 0x14a   : > { %p15_p11 = scmp.ge.s32.totalorder %s18_s14, 4   ;;  %s1284_s10 = smov %s866_s11 }
 0x14b   : > { %s1285_s11 = smov %s949_s21  ;;  %s1286_s12 = smov %s874_s13 }
 0x14c   : > { %s1287_s13 = smov %s1289_s16  ;;  %17 = sbr.rel (!%p15_p11) target bundleno = 6 (0x6), region = 89 }
 0x153   :  { %553 = vsyncpa [#allocation6], 1 }
 0x154   :  { %555 = vsyncpa [#allocation6 + $0x1], 1 }
 0x155   :  { %556 = vsyncpa [#allocation8], 1 }
 0x156   :  { %558 = vsyncpa [#allocation8 + $0x1], 1 }

</bundles_post_ra>
